<compile_context>
chip_gen: v7x
topology: tpu7x:2x2x1
jax: 0.10.0
libtpu: 0.0.40
codegen_flags: <defaults>
</compile_context>

<pallas_src>
import functools

import jax
import jax.numpy as jnp
from jax.experimental import pallas as pl
from jax.experimental.pallas import tpu as pltpu


def _upsample_kernel(x_ref, r_ref, o_ref, *, compute_dtype):
    # x_ref: (TM, GW)  r_ref: (GW, 4*GW)  o_ref: (TM, 4*GW)
    x = x_ref[...].astype(compute_dtype)          # no-op for f32/bf16 inputs
    y = jnp.dot(x, r_ref[...], preferred_element_type=jnp.float32)
    o_ref[...] = y.astype(o_ref.dtype)


def upsample_nearest_2x(x):
    """x: (N, C, H, W) -> (N, C, 2H, 2W), nearest-neighbor, scale_factor=2."""
    N, C, H, W = x.shape
    OH, OW = 2 * H, 2 * W
    M = N * C * H

    # Compute dtype: bf16 stays bf16 (native MXU), everything else via f32.
    # TODO(synk): integer inputs with |x| >= 2**24 lose precision on the f32 MXU path.
    compute_dtype = jnp.bfloat16 if x.dtype == jnp.bfloat16 else jnp.float32

    in_isz = jnp.dtype(x.dtype).itemsize
    r_isz = jnp.dtype(compute_dtype).itemsize
    align = max(8, 32 // in_isz)          # sublane alignment for the block rows

    # --- lane packing: fold G input rows per kernel row so stores are >=128 lanes.
    G = 1
    if 4 * W < 128:
        for g in range(max(1, 128 // (4 * W)), 0, -1):
            if M % g == 0:
                G = g
                break
    MG = M // G
    GW = G * W
    LW = 4 * GW

    # --- replication matrix: (W, 4W) then block-diagonal over the G packed rows.
    k = jnp.arange(4 * W)
    j = jnp.arange(W)
    r2 = ((k[None, :] % (2 * W)) // 2 == j[:, None]).astype(compute_dtype)
    r_mat = jnp.kron(jnp.eye(G, dtype=compute_dtype), r2) if G > 1 else r2  # (GW, LW)

    # --- row-tile size from a conservative VMEM budget (fits v5e/v6e/v7x).
    r_bytes = GW * LW * r_isz
    budget = 32 * 1024 * 1024
    row_bytes = 2 * (GW * in_isz + LW * in_isz)       # double-buffered in + out, per row
    row_budget = max(budget - 2 * r_bytes, 4 * 1024 * 1024)
    tm_cap = max(align, row_budget // row_bytes)
    if MG <= tm_cap:
        TM = MG
    else:
        TM = None
        t = (tm_cap // align) * align
        while t >= align:
            if MG % t == 0:
                TM = t
                break
            t -= align
        if TM is None:
            TM = MG  # rare fallback: one big block (vmem limit raised below)

    xf = x.reshape(MG, GW)

    vmem_need = 2 * (TM * GW * in_isz + TM * LW * in_isz) + 2 * r_bytes + (2 << 20)
    vmem_limit = int(min(max(vmem_need, 32 << 20), 112 << 20))

    kernel = functools.partial(_upsample_kernel, compute_dtype=compute_dtype)

    out_flat = pl.pallas_call(
        kernel,
        out_shape=jax.ShapeDtypeStruct((MG, LW), x.dtype),
        grid=(MG // TM,),
        in_specs=[
            pl.BlockSpec((TM, GW), lambda i: (i, 0)),
            pl.BlockSpec((GW, LW), lambda i: (0, 0)),   # constant block -> fetched once
        ],
        out_specs=pl.BlockSpec((TM, LW), lambda i: (i, 0)),
        compiler_params=pltpu.CompilerParams(
            dimension_semantics=("parallel",),
            vmem_limit_bytes=vmem_limit,
        ),
        cost_estimate=pl.CostEstimate(
            flops=MG * LW,                                   # copy-like: mem-bound op
            transcendentals=0,
            bytes_accessed=(M * W + 4 * M * W) * in_isz + r_bytes,
        ),
    )(xf, r_mat)

    return out_flat.reshape(N, C, OH, OW)


if __name__ == "__main__":
    key = jax.random.PRNGKey(0)
    x = jax.random.normal(key, (2, 4, 16, 16), dtype=jnp.float32)

    y = upsample_nearest_2x(x)
    y = jax.block_until_ready(y)

    ref = jnp.repeat(jnp.repeat(x, 2, axis=2), 2, axis=3)
    assert y.shape == (2, 4, 32, 32), y.shape
    assert y.dtype == x.dtype
    assert jnp.array_equal(y, ref), "mismatch vs reference nearest upsample (f32)"

    # bf16 path (native MXU dtype) must also be bit-exact.
    xb = x.astype(jnp.bfloat16)
    yb = jax.block_until_ready(upsample_nearest_2x(xb))
    refb = jnp.repeat(jnp.repeat(xb, 2, axis=2), 2, axis=3)
    assert yb.dtype == jnp.bfloat16
    assert jnp.array_equal(yb, refb), "mismatch vs reference nearest upsample (bf16)"

    print("KERNEL_OK")
</pallas_src>

<mosaic_0001>
module attributes {stable_mosaic.version = 11 : i64} {
  func.func @_upsample_kernel(%arg0: i32, %arg1: memref<64x32xf32, #tpu.memory_space<vmem>>, %arg2: memref<32x128xf32, #tpu.memory_space<vmem>>, %arg3: memref<64x128xf32, #tpu.memory_space<vmem>>) attributes {dimension_semantics = [#tpu.dimension_semantics<parallel>], iteration_bounds = array<i64: 1>, scalar_prefetch = 0 : i64, scratch_operands = 0 : i64, tpu.core_type = #tpu.core_type<tc>, window_params = [{transform_indices = @transform_0, window_bounds = array<i64: 64, 32>}, {pipeline_mode = #tpu.pipeline_mode<synchronous>, transform_indices = @transform_1, window_bounds = array<i64: 32, 128>}, {transform_indices = @transform_2, window_bounds = array<i64: 64, 128>}]} {
    %c0 = arith.constant 0 : index
    %c0_0 = arith.constant 0 : index
    %0 = vector.load %arg1[%c0, %c0_0] : memref<64x32xf32, #tpu.memory_space<vmem>>, vector<64x32xf32>
    %c0_1 = arith.constant 0 : index
    %c0_2 = arith.constant 0 : index
    %1 = vector.load %arg2[%c0_1, %c0_2] : memref<32x128xf32, #tpu.memory_space<vmem>>, vector<32x128xf32>
    %cst = arith.constant dense<0.000000e+00> : vector<64x128xf32>
    %2 = tpu.matmul %0, %1, %cst {dimension_numbers = #tpu.dot_dimension_numbers<[1], [0], [0], [1], [0, 0, 1, 1], [], []>} : vector<64x32xf32>, vector<32x128xf32>, vector<64x128xf32> -> vector<64x128xf32>
    %c0_3 = arith.constant 0 : index
    %c0_4 = arith.constant 0 : index
    %3 = vector.load %arg3[%c0_3, %c0_4] : memref<64x128xf32, #tpu.memory_space<vmem>>, vector<64x128xf32>
    tpu.vector_store %arg3[%c0_3, %c0_4], %2 {strides = array<i32>} : memref<64x128xf32, #tpu.memory_space<vmem>>, vector<64x128xf32>,
    return
  }
  func.func @transform_0(%arg0: i32) -> (i32, i32) {
    %c0_i32 = arith.constant 0 : i32
    %c0_i32_0 = arith.constant 0 : i32
    return %arg0, %c0_i32 : i32, i32
  }
  func.func @transform_1(%arg0: i32) -> (i32, i32) {
    %c0_i32 = arith.constant 0 : i32
    %c0_i32_0 = arith.constant 0 : i32
    %c0_i32_1 = arith.constant 0 : i32
    return %c0_i32, %c0_i32_0 : i32, i32
  }
  func.func @transform_2(%arg0: i32) -> (i32, i32) {
    %c0_i32 = arith.constant 0 : i32
    %c0_i32_0 = arith.constant 0 : i32
    return %arg0, %c0_i32 : i32, i32
  }
}

</mosaic_0001>

<bundles_post_ra>
// kernel: tpu_custom_call.1
= control target key start
LH: loop header
LB: loop body
LE: loop exit
PB: predicated region body
PF: predicated region fallthrough
CT: control target
= control target key end

     0   :  { %vm24_vm0 = vcmask 261120   ;;  %s331_s0 = inlined_call_operand.vmem [shape: f32[64,32], index: 0, kind: input, shape index: {}]   ;;  %s332_s1 = inlined_call_operand.vmem [shape: f32[32,128], index: 1, kind: input, shape index: {}]   ;;  %s333_s2 = inlined_call_operand.hbm [shape: f32[64,128], index: 2, kind: output, shape index: {}]  }
   0x1   :  { %v20_v0 = vld [vmem:[%s332_s1] sm:$0xff]  ;;  %v21_v1 = vld [vmem:[%s332_s1 + $0x8] sm:$0xff]  ;;  %v22_v2 = vld [vmem:[%s332_s1 + $0x10] sm:$0xff] }
   0x2   :  { %v218_v3 = vpack.c.bf16 %v21_v1, %v20_v0  ;;  %v23_v4 = vld [vmem:[%s332_s1 + $0x18] sm:$0xff]  ;;  %v12_v5 = vld [vmem:[%s331_s0] sm:$0xff] }
   0x3   :  { %v16_v6 = vld [vmem:[%s331_s0 + $0x20] sm:$0xff]  ;;  %v222_v7 = vpack.c.bf16 %v23_v4, %v22_v2  ;;  %206 = vmatprep.mubr.msk.f32.mxu0 %vm24_vm0, %v12_v5 }
   0x4   :  { %212 = vmatprep.mubr.msk.f32.mxu1 %vm24_vm0, %v16_v6  ;;  %219 = vmatprep.subr.bf16.mxu0 %v218_v3 }
   0x5   :  { %226 = vmatprep.subr.bf16.mxu1 %v218_v3  ;;  %221 = vmatpush3.bf16.msra.mxu0 %v218_v3 }
   0x6   :  { %228 = vmatpush3.bf16.msra.mxu1 %v218_v3 }
   0x7   :  { %7 = vsyncpa [#allocation3], 0  ;;  %223 = vmatprep.subr.bf16.mxu0 %v222_v7  ;;  %227 = vmatprep.subr.bf16.mxu1 %v222_v7  ;;  %v13_v8 = vld [vmem:[%s331_s0 + $0x8] sm:$0xff]  ;;  %v14_v10 = vld [vmem:[%s331_s0 + $0x10] sm:$0xff]  ;;  %s257_s4 = smov [#allocation2]  }
   0x8   :  { %v17_v9 = vld [vmem:[%s331_s0 + $0x28] sm:$0xff]  ;;  %v18_v11 = vld [vmem:[%s331_s0 + $0x30] sm:$0xff]  ;;  %v15_v12 = vld [vmem:[%s331_s0 + $0x18] sm:$0xff]  ;;  %s167_s5 = sshll.u32 %s257_s4, 4  ;;  %s168_s5 = int_to_ptr.vmem [resolvable:$true] %s167_s5 }
   0x9   :  { %225 = vmatpush3.bf16.msra.mxu0 %v222_v7  ;;  %v19_v13 = vld [vmem:[%s331_s0 + $0x38] sm:$0xff]  ;;  %s233_s0 = scalar_lea.vmem %s168_s5, 1024  ;;  %p238_p1 = scmp.lt.s32.totalorder %s168_s5, %s168_s5 }
   0xa   :  { %229 = vmatpush3.bf16.msra.mxu1 %v222_v7  ;;  %p234_p0 = scmp.ne.s32.totalorder %s168_s5, %s233_s0  ;;  %p239_p2 = scmp.lt.s32.totalorder %s233_s0, %s233_s0 }
   0xc   :  { %207 = vmatmul.mubr.msk.f32.vlgmr.msra.gmra.mrb[0].mxu0 %vm24_vm0, %v13_v8  ;;  %p240_p3 = por %p239_p2, %p238_p1 }
   0xd   :  { %213 = vmatmul.mubr.msk.f32.vlgmr.msra.gmra.mrb[0].mxu1 %vm24_vm0, %v17_v9  ;;  %209 = vmatprep.mubr.msk.f32.mxu0 %vm24_vm0, %v14_v10 }
   0xe   :  { %215 = vmatprep.mubr.msk.f32.mxu1 %vm24_vm0, %v18_v11  ;;  %p241_p4 = pnand %p240_p3, %p234_p0 }
  0x10   :  { %210 = vmatmul.mubr.msk.f32.gmra.mrb[2].mxu0 %vm24_vm0, %v15_v12 }
  0x11   :  { %216 = vmatmul.mubr.msk.f32.gmra.mrb[2].mxu1 %vm24_vm0, %v19_v13 }
  0xdf   :  { %v208_v14 = vpop.f32.mrb[0].mxu0 }
  0xe0   :  { %v214_v15 = vpop.f32.mrb[0].mxu1  ;;  %155 = vst [vmem:[#allocation2 + $0x8] sm:$0xff] %v208_v14  ;;  %v115_v16 = vpop.f32.mrb[1].mxu0 }
  0xe1   :  { %159 = vst [vmem:[#allocation2 + $0x28] sm:$0xff] %v214_v15  ;;  %v135_v17 = vpop.f32.mrb[1].mxu1  ;;  %154 = vst [vmem:[#allocation2] sm:$0xff] %v115_v16 }
  0xe2   :  { %158 = vst [vmem:[#allocation2 + $0x20] sm:$0xff] %v135_v17 }
  0xe3   :  { %v211_v18 = vpop.f32.mrb[2].mxu0 }
  0xe4   :  { %v217_v19 = vpop.f32.mrb[2].mxu1  ;;  %157 = vst [vmem:[#allocation2 + $0x18] sm:$0xff] %v211_v18  ;;  %v125_v20 = vpop.f32.mrb[3].mxu0 }
  0xe5   :  { %161 = vst [vmem:[#allocation2 + $0x38] sm:$0xff] %v217_v19  ;;  %v145_v21 = vpop.f32.mrb[3].mxu1  ;;  %156 = vst [vmem:[#allocation2 + $0x10] sm:$0xff] %v125_v20 }
  0xe6   :  { %160 = vst [vmem:[#allocation2 + $0x30] sm:$0xff] %v145_v21 }
  0xe7   :  { %244 = shalt.err (!%p241_p4)
}
  0xe8   :  { %s245_s8 = scalar_lea.hbm %s333_s2, 1024 }
  0xe9   :  { %p246_p5 = scmp.ne.s32.totalorder %s333_s2, %s245_s8  ;;  %p249_p6 = scmp.lt.u32.totalorder %s245_s8, %s333_s2 }
  0xeb   :  { %p251_p7 = pnand %p249_p6, %p246_p5 }
  0xed   :  { %254 = shalt.err (!%p251_p7)
}
  0xee   :  { %s258_s13 = smov 128   ;;  %s259_s14 = smov 8  }
  0xef   :  { %173 = dma.vmem_to_hbm [thread:$0]  %s168_s5, 1024, %s333_s2, [#allocation3], %s258_s13, %s258_s13, %s259_s14  }
  0xf0   :  { %255 = dma.done.wait [#allocation3], 1024  }
  0xf1   :  { %256 = vsyncadd [#allocation3], 4294966272 }
  0xf2   :  { %177 = vsyncpa [#allocation3], 1 }

</bundles_post_ra>
